<compile_context>
chip_gen: v6e
topology: v6e:2x2x1
jax: 0.10.0
libtpu: 0.0.40
codegen_flags: <defaults>
</compile_context>

<pallas_src>
import functools

import jax
import jax.numpy as jnp
from jax.experimental import pallas as pl
from jax.experimental.pallas import tpu as pltpu


_HAS_BUFFERED = hasattr(pl, "Buffered")


def _cdiv(a, b):
    return -(-a // b)


def _act(x, beta):
    """ReLU (beta == 0) or torch.nn.Softplus(beta) incl. its linear-region threshold."""
    if beta > 0:
        xf = x.astype(jnp.float32)          # keep transcendental math in f32 (v5e has no bf16 EUP)
        bx = beta * xf
        # Clamp exp's argument: the bx > 20 branch is replaced by the identity anyway.
        sp = jnp.log1p(jnp.exp(jnp.minimum(bx, 20.0))) * (1.0 / beta)
        return jnp.where(bx > 20.0, xf, sp)
    return jnp.maximum(x, 0.0)


def _kernel_shortcut(x_ref, w0_ref, b0_ref, w1_ref, b1_ref, ws_ref, o_ref, *, beta):
    x = x_ref[...]                                                        # (C_in, ts)
    a0 = _act(x, beta).astype(w0_ref.dtype)
    h = jnp.dot(w0_ref[...], a0, preferred_element_type=jnp.float32) + b0_ref[...]   # (C_h, ts)
    a1 = _act(h, beta).astype(w1_ref.dtype)
    dx = jnp.dot(w1_ref[...], a1, preferred_element_type=jnp.float32) + b1_ref[...]  # (C_out, ts)
    x_s = jnp.dot(ws_ref[...], x.astype(ws_ref.dtype),
                  preferred_element_type=jnp.float32)                     # shortcut conv (no bias)
    o_ref[...] = (x_s + dx).astype(o_ref.dtype)


def _kernel_identity(x_ref, w0_ref, b0_ref, w1_ref, b1_ref, o_ref, *, beta):
    x = x_ref[...]                                                        # (C_in, ts)
    a0 = _act(x, beta).astype(w0_ref.dtype)
    h = jnp.dot(w0_ref[...], a0, preferred_element_type=jnp.float32) + b0_ref[...]
    a1 = _act(h, beta).astype(w1_ref.dtype)
    dx = jnp.dot(w1_ref[...], a1, preferred_element_type=jnp.float32) + b1_ref[...]
    o_ref[...] = (x.astype(jnp.float32) + dx).astype(o_ref.dtype)


def _vmem_policy():
    """Return (tile_budget_bytes, scoped_vmem_limit_bytes, min_grid_steps) per TPU generation."""
    try:
        vmem_cap = int(pltpu.get_tpu_info().vmem_capacity_bytes)
    except Exception:
        vmem_cap = None
    if vmem_cap is not None and vmem_cap > 96 * 1024 * 1024:
        # 128 MiB parts (v5e / v6e), single TensorCore: use the big VMEM for long DMAs.
        return 64 << 20, 100 << 20, 1
    # 64 MiB per core (v7x) or unknown: conservative budget, and keep >= 2 grid steps
    # so both v7x TensorCores receive work via the "parallel" grid axes.
    return 32 << 20, 48 << 20, 2


def _pick_spatial_tile(S, N, c_in, c_h, c_out, itemsize, weight_bytes, weight_buffers,
                       tile_budget, ts_cap, min_steps):
    """Largest lane-aligned spatial tile that fits the VMEM budget after the weight blocks."""
    budget = max(tile_budget - weight_buffers * weight_bytes, 2 << 20)
    # Per spatial lane: double-buffered in/out blocks + fp32 intermediates.
    per_lane = 2 * c_in * itemsize + 2 * c_out * itemsize + 4 * (c_in + 2 * c_h + 3 * c_out)
    cap = (budget // per_lane) // 128 * 128
    cap = max(128, min(ts_cap, cap))
    if S <= cap:
        ts = S                                   # one full-extent spatial block per batch element
    else:
        nt = _cdiv(S, cap)                       # balance tiles so the ragged tail stays small
        ts = _cdiv(_cdiv(S, nt), 128) * 128
    # v7x: back off the tile until both TensorCores have at least one grid step.
    while N * _cdiv(S, ts) < min_steps and ts >= 256:
        ts = _cdiv(_cdiv(ts, 2), 128) * 128
    return ts


def resnet_block_3dconv(x_ncdhw, params, *, beta=0.0, ts_cap=32768, matmul_precision="auto"):
    """Forward pass of ResnetBlock3DConv (kernel_size=1, stride=1, padding=0).

    x_ncdhw: (N, C_in, D, H, W)
    params:  w0 (C_in,C_h), b0 (C_h,), w1 (C_h,C_out), b1 (C_out,),
             optional ws (C_in,C_out) when C_in != C_out.
    Returns (N, C_out, D, H, W) in x_ncdhw.dtype.
    """
    # TODO(synk): general kernel_size>1 / stride / padding Conv3d not implemented
    # (module defaults are pointwise 1x1x1 convolutions).
    # TODO(synk): very large channel counts (weights >> tile budget) would need a
    # channel-tiled grid axis; out of scope for this module's typical sizes.
    N, C_in, D, H, W = x_ncdhw.shape
    in_dtype = x_ncdhw.dtype
    itemsize = jnp.dtype(in_dtype).itemsize

    C_h = params["w0"].shape[1]
    C_out = params["w1"].shape[1]
    has_shortcut = C_in != C_out

    # MXU operand dtype: bf16 inputs feed the MXU directly; f32 inputs use true f32
    # matmuls for small channel counts (memory-bound, keeps fp32 tolerances) and switch
    # to bf16 operands with f32 accumulation once the block is compute-bound (large C),
    # avoiding the ~3-6x multi-pass f32 MXU emulation penalty.
    if in_dtype == jnp.bfloat16 or matmul_precision == "bfloat16":
        mxu_dtype = jnp.bfloat16
    elif matmul_precision == "float32":
        mxu_dtype = jnp.float32
    else:
        mxu_dtype = jnp.bfloat16 if max(C_in, C_h, C_out) >= 256 else jnp.float32

    w0t = params["w0"].T.astype(mxu_dtype)                # (C_h, C_in)
    w1t = params["w1"].T.astype(mxu_dtype)                # (C_out, C_h)
    b0 = params["b0"].reshape(-1, 1).astype(jnp.float32)  # (C_h, 1)
    b1 = params["b1"].reshape(-1, 1).astype(jnp.float32)  # (C_out, 1)

    S = D * H * W
    # Free reshape, no transpose and no HBM padding pass: ragged spatial tails are
    # handled by Pallas edge masking on the last grid block.
    x = x_ncdhw.reshape(N, C_in, S)

    consts = [w0t, b0, w1t, b1]
    if has_shortcut:
        consts.append(params["ws"].T.astype(mxu_dtype))   # (C_out, C_in)
    weight_bytes = sum(int(a.size) * a.dtype.itemsize for a in consts)

    tile_budget, vmem_limit, min_steps = _vmem_policy()

    M = N * S
    flops = 2 * M * (C_in * C_h + C_h * C_out + (C_in * C_out if has_shortcut else 0))
    transcendentals = 2 * M * (C_in + C_h) if beta > 0 else 0
    bytes_accessed = M * (C_in + C_out) * itemsize + weight_bytes

    kernel = functools.partial(_kernel_shortcut if has_shortcut else _kernel_identity,
                               beta=beta)

    def call(single_buffer_consts):
        weight_buffers = 1 if single_buffer_consts else 2
        ts = _pick_spatial_tile(S, N, C_in, C_h, C_out, itemsize, weight_bytes,
                                weight_buffers, tile_budget, ts_cap, min_steps)
        grid = (N, _cdiv(S, ts))

        def const_spec(shape):
            imap = lambda n, s: (0,) * len(shape)
            if single_buffer_consts:
                # Constant index_map -> the second pipeline buffer is pure waste.
                return pl.BlockSpec(shape, imap, pipeline_mode=pl.Buffered(1))
            return pl.BlockSpec(shape, imap)

        x_spec = pl.BlockSpec((None, C_in, ts), lambda n, s: (n, 0, s))
        out_spec = pl.BlockSpec((None, C_out, ts), lambda n, s: (n, 0, s))
        in_specs = [x_spec,
                    const_spec((C_h, C_in)), const_spec((C_h, 1)),
                    const_spec((C_out, C_h)), const_spec((C_out, 1))]
        if has_shortcut:
            in_specs.append(const_spec((C_out, C_in)))
        # TODO(synk): if a v7x profile shows exposed DMA with many grid steps, raise
        # x/out buffering depth via pipeline_mode=pl.Buffered(3) (VMEM headroom exists
        # once the weights are single-buffered).

        return pl.pallas_call(
            kernel,
            out_shape=jax.ShapeDtypeStruct((N, C_out, S), in_dtype),
            grid_spec=pltpu.PrefetchScalarGridSpec(
                num_scalar_prefetch=0,
                grid=grid,
                in_specs=in_specs,
                out_specs=out_spec,
            ),
            compiler_params=pltpu.CompilerParams(
                dimension_semantics=("parallel", "parallel"),   # both axes shard across v7x cores
                vmem_limit_bytes=vmem_limit,
            ),
            cost_estimate=pl.CostEstimate(
                flops=int(flops),
                transcendentals=int(transcendentals),
                bytes_accessed=int(bytes_accessed),
            ),
        )(x, *consts)

    if _HAS_BUFFERED:
        try:
            out = call(True)
        except Exception:
            out = call(False)   # older runtimes without pipeline_mode lowering support
    else:
        out = call(False)

    return out.reshape(N, C_out, D, H, W)


def _init_params(key, size_in, size_out=None, size_h=None):
    """Deterministic init mirroring ResnetBlock3DConv.__init__ (kernel_size=1).

    Conv weights (out, in, 1,1,1) are stored as (in, out) matmul weights.
    """
    if size_out is None:
        size_out = size_in
    if size_h is None:
        size_h = min(size_in, size_out)
    k0, ks = jax.random.split(key)
    std0 = (2.0 / size_in) ** 0.5   # kaiming_normal_, fan_in = size_in * 1*1*1
    params = {
        "w0": std0 * jax.random.normal(k0, (size_in, size_h), jnp.float32),
        "b0": jnp.zeros((size_h,), jnp.float32),
        "w1": jnp.zeros((size_h, size_out), jnp.float32),   # nn.init.zeros_(conv_1.weight)
        "b1": jnp.zeros((size_out,), jnp.float32),
    }
    if size_in != size_out:
        params["ws"] = std0 * jax.random.normal(ks, (size_in, size_out), jnp.float32)
    return params


def _reference(x_ncdhw, params, beta=0.0):
    """Plain-JAX reference of the forward pass (NCDHW), VPU-only (no MXU precision ambiguity)."""
    def act(v):
        if beta > 0:
            bx = beta * v
            sp = jnp.log1p(jnp.exp(jnp.minimum(bx, 20.0))) / beta
            return jnp.where(bx > 20.0, v, sp)
        return jnp.maximum(v, 0.0)

    def pointwise(v, w, b):
        # Explicit broadcast-sum so the reference contraction is exact f32.
        y = jnp.sum(v[:, :, None] * w[None, :, :, None, None, None], axis=1)
        if b is not None:
            y = y + b[None, :, None, None, None]
        return y

    net = pointwise(act(x_ncdhw), params["w0"], params["b0"])
    dx = pointwise(act(net), params["w1"], params["b1"])
    x_s = pointwise(x_ncdhw, params["ws"], None) if "ws" in params else x_ncdhw
    return x_s + dx


if __name__ == "__main__":
    key = jax.random.PRNGKey(0)
    kx, kp1, kp2, kw1a, kw1b = jax.random.split(key, 5)

    # Small shapes: batch=2, size_in=4, spatial D=H=W=8  (S = 512 lanes per batch element)
    N, C_in, D, H, W = 2, 4, 8, 8, 8
    x = jax.random.normal(kx, (N, C_in, D, H, W), jnp.float32)

    # Case 1: size_in != size_out -> shortcut conv path (ReLU). Non-zero conv_1 weight so the
    # full act->conv0->act->conv1 chain is exercised (module init zeros it out).
    p_sc = _init_params(kp1, size_in=C_in, size_out=8)
    p_sc["w1"] = 0.5 * jax.random.normal(kw1a, p_sc["w1"].shape, jnp.float32)
    p_sc["b1"] = 0.1 * jnp.ones_like(p_sc["b1"])
    out_sc = jax.block_until_ready(resnet_block_3dconv(x, p_sc, beta=0.0))
    ref_sc = _reference(x, p_sc, beta=0.0)
    assert out_sc.shape == (N, 8, D, H, W)
    assert jnp.allclose(out_sc, ref_sc, atol=1e-4, rtol=1e-4)

    # Case 2: size_out == size_in -> identity shortcut (ReLU).
    p_id = _init_params(kp2, size_in=C_in)
    p_id["w1"] = 0.5 * jax.random.normal(kw1b, p_id["w1"].shape, jnp.float32)
    out_id = jax.block_until_ready(resnet_block_3dconv(x, p_id, beta=0.0))
    ref_id = _reference(x, p_id, beta=0.0)
    assert out_id.shape == (N, C_in, D, H, W)
    assert jnp.allclose(out_id, ref_id, atol=1e-4, rtol=1e-4)

    # Case 3: Softplus activation (beta > 0), shortcut path.
    out_sp = jax.block_until_ready(resnet_block_3dconv(x, p_sc, beta=1.0))
    ref_sp = _reference(x, p_sc, beta=1.0)
    assert jnp.allclose(out_sp, ref_sp, atol=1e-4, rtol=1e-4)

    # Case 4: bf16 input -> bf16 MXU operands with f32 accumulation, bf16 output.
    x_bf16 = x.astype(jnp.bfloat16)
    out_bf = jax.block_until_ready(resnet_block_3dconv(x_bf16, p_id, beta=0.0))
    ref_bf = _reference(x_bf16.astype(jnp.float32), p_id, beta=0.0)
    assert out_bf.dtype == jnp.bfloat16
    assert jnp.allclose(out_bf.astype(jnp.float32), ref_bf, atol=1e-1, rtol=1e-1)

    print("KERNEL_OK")
</pallas_src>

<mosaic_0001>
module attributes {stable_mosaic.version = 11 : i64} {
  func.func @_kernel_shortcut(%arg0: i32, %arg1: i32, %arg2: memref<1x4x512xf32, #tpu.memory_space<vmem>>, %arg3: memref<4x4xf32, #tpu.memory_space<vmem>>, %arg4: memref<4x1xf32, #tpu.memory_space<vmem>>, %arg5: memref<8x4xf32, #tpu.memory_space<vmem>>, %arg6: memref<8x1xf32, #tpu.memory_space<vmem>>, %arg7: memref<8x4xf32, #tpu.memory_space<vmem>>, %arg8: memref<1x8x512xf32, #tpu.memory_space<vmem>>) attributes {dimension_semantics = [#tpu.dimension_semantics<parallel>, #tpu.dimension_semantics<parallel>], iteration_bounds = array<i64: 2, 1>, scalar_prefetch = 0 : i64, scratch_operands = 0 : i64, tpu.core_type = #tpu.core_type<tc>, window_params = [{transform_indices = @transform_0, window_bounds = array<i64: 1, 4, 512>}, {pipeline_mode = #tpu.pipeline_mode<synchronous>, transform_indices = @transform_1, window_bounds = array<i64: 4, 4>}, {pipeline_mode = #tpu.pipeline_mode<synchronous>, transform_indices = @transform_2, window_bounds = array<i64: 4, 1>}, {pipeline_mode = #tpu.pipeline_mode<synchronous>, transform_indices = @transform_3, window_bounds = array<i64: 8, 4>}, {pipeline_mode = #tpu.pipeline_mode<synchronous>, transform_indices = @transform_4, window_bounds = array<i64: 8, 1>}, {pipeline_mode = #tpu.pipeline_mode<synchronous>, transform_indices = @transform_5, window_bounds = array<i64: 8, 4>}, {transform_indices = @transform_6, window_bounds = array<i64: 1, 8, 512>}]} {
    %c0 = arith.constant 0 : index
    %c0_0 = arith.constant 0 : index
    %c0_1 = arith.constant 0 : index
    %0 = vector.load %arg2[%c0, %c0_0, %c0_1] : memref<1x4x512xf32, #tpu.memory_space<vmem>>, vector<1x4x512xf32>
    %1 = vector.shape_cast %0 : vector<1x4x512xf32> to vector<4x512xf32>
    %cst = arith.constant 0.000000e+00 : f32
    %2 = vector.broadcast %cst : f32 to vector<4x512xf32>
    %3 = arith.maximumf %1, %2 : vector<4x512xf32>
    %c0_2 = arith.constant 0 : index
    %c0_3 = arith.constant 0 : index
    %4 = vector.load %arg3[%c0_2, %c0_3] : memref<4x4xf32, #tpu.memory_space<vmem>>, vector<4x4xf32>
    %cst_4 = arith.constant dense<0.000000e+00> : vector<4x512xf32>
    %5 = tpu.matmul %4, %3, %cst_4 {dimension_numbers = #tpu.dot_dimension_numbers<[1], [0], [0], [1], [0, 0, 1, 1], [], []>} : vector<4x4xf32>, vector<4x512xf32>, vector<4x512xf32> -> vector<4x512xf32>
    %c0_5 = arith.constant 0 : index
    %c0_6 = arith.constant 0 : index
    %6 = vector.load %arg4[%c0_5, %c0_6] : memref<4x1xf32, #tpu.memory_space<vmem>>, vector<4x1xf32>
    %7 = vector.broadcast %6 : vector<4x1xf32> to vector<4x512xf32>
    %8 = arith.addf %5, %7 : vector<4x512xf32>
    %cst_7 = arith.constant 0.000000e+00 : f32
    %9 = vector.broadcast %cst_7 : f32 to vector<4x512xf32>
    %10 = arith.maximumf %8, %9 : vector<4x512xf32>
    %c0_8 = arith.constant 0 : index
    %c0_9 = arith.constant 0 : index
    %11 = vector.load %arg5[%c0_8, %c0_9] : memref<8x4xf32, #tpu.memory_space<vmem>>, vector<8x4xf32>
    %cst_10 = arith.constant dense<0.000000e+00> : vector<8x512xf32>
    %12 = tpu.matmul %11, %10, %cst_10 {dimension_numbers = #tpu.dot_dimension_numbers<[1], [0], [0], [1], [0, 0, 1, 1], [], []>} : vector<8x4xf32>, vector<4x512xf32>, vector<8x512xf32> -> vector<8x512xf32>
    %c0_11 = arith.constant 0 : index
    %c0_12 = arith.constant 0 : index
    %13 = vector.load %arg6[%c0_11, %c0_12] : memref<8x1xf32, #tpu.memory_space<vmem>>, vector<8x1xf32>
    %14 = vector.broadcast %13 : vector<8x1xf32> to vector<8x512xf32>
    %15 = arith.addf %12, %14 : vector<8x512xf32>
    %c0_13 = arith.constant 0 : index
    %c0_14 = arith.constant 0 : index
    %16 = vector.load %arg7[%c0_13, %c0_14] : memref<8x4xf32, #tpu.memory_space<vmem>>, vector<8x4xf32>
    %cst_15 = arith.constant dense<0.000000e+00> : vector<8x512xf32>
    %17 = tpu.matmul %16, %1, %cst_15 {dimension_numbers = #tpu.dot_dimension_numbers<[1], [0], [0], [1], [0, 0, 1, 1], [], []>} : vector<8x4xf32>, vector<4x512xf32>, vector<8x512xf32> -> vector<8x512xf32>
    %18 = arith.addf %17, %15 : vector<8x512xf32>
    %c0_16 = arith.constant 0 : index
    %c0_17 = arith.constant 0 : index
    %c0_18 = arith.constant 0 : index
    %19 = vector.load %arg8[%c0_16, %c0_17, %c0_18] : memref<1x8x512xf32, #tpu.memory_space<vmem>>, vector<1x8x512xf32>
    %20 = vector.shape_cast %19 : vector<1x8x512xf32> to vector<8x512xf32>
    %21 = vector.shape_cast %18 : vector<8x512xf32> to vector<1x8x512xf32>
    tpu.vector_store %arg8[%c0_16, %c0_17, %c0_18], %21 {strides = array<i32>} : memref<1x8x512xf32, #tpu.memory_space<vmem>>, vector<1x8x512xf32>,
    return
  }
  func.func @transform_0(%arg0: i32, %arg1: i32) -> (i32, i32, i32) {
    %c0_i32 = arith.constant 0 : i32
    %c0_i32_0 = arith.constant 0 : i32
    return %arg0, %c0_i32, %arg1 : i32, i32, i32
  }
  func.func @transform_1(%arg0: i32, %arg1: i32) -> (i32, i32) {
    %c0_i32 = arith.constant 0 : i32
    %c0_i32_0 = arith.constant 0 : i32
    %c0_i32_1 = arith.constant 0 : i32
    return %c0_i32, %c0_i32_0 : i32, i32
  }
  func.func @transform_2(%arg0: i32, %arg1: i32) -> (i32, i32) {
    %c0_i32 = arith.constant 0 : i32
    %c0_i32_0 = arith.constant 0 : i32
    %c0_i32_1 = arith.constant 0 : i32
    return %c0_i32, %c0_i32_0 : i32, i32
  }
  func.func @transform_3(%arg0: i32, %arg1: i32) -> (i32, i32) {
    %c0_i32 = arith.constant 0 : i32
    %c0_i32_0 = arith.constant 0 : i32
    %c0_i32_1 = arith.constant 0 : i32
    return %c0_i32, %c0_i32_0 : i32, i32
  }
  func.func @transform_4(%arg0: i32, %arg1: i32) -> (i32, i32) {
    %c0_i32 = arith.constant 0 : i32
    %c0_i32_0 = arith.constant 0 : i32
    %c0_i32_1 = arith.constant 0 : i32
    return %c0_i32, %c0_i32_0 : i32, i32
  }
  func.func @transform_5(%arg0: i32, %arg1: i32) -> (i32, i32) {
    %c0_i32 = arith.constant 0 : i32
    %c0_i32_0 = arith.constant 0 : i32
    %c0_i32_1 = arith.constant 0 : i32
    return %c0_i32, %c0_i32_0 : i32, i32
  }
  func.func @transform_6(%arg0: i32, %arg1: i32) -> (i32, i32, i32) {
    %c0_i32 = arith.constant 0 : i32
    %c0_i32_0 = arith.constant 0 : i32
    return %arg0, %c0_i32, %arg1 : i32, i32, i32
  }
}

module attributes {stable_mosaic.version = 11 : i64} {
  func.func @_kernel_shortcut(%arg0: i32, %arg1: i32, %arg2: memref<1x4x512xf32, #tpu.memory_space<vmem>>, %arg3: memref<4x4xf32, #tpu.memory_space<vmem>>, %arg4: memref<4x1xf32, #tpu.memory_space<vmem>>, %arg5: memref<8x4xf32, #tpu.memory_space<vmem>>, %arg6: memref<8x1xf32, #tpu.memory_space<vmem>>, %arg7: memref<8x4xf32, #tpu.memory_space<vmem>>, %arg8: memref<1x8x512xf32, #tpu.memory_space<vmem>>) attributes {dimension_semantics = [#tpu.dimension_semantics<parallel>, #tpu.dimension_semantics<parallel>], iteration_bounds = array<i64: 2, 1>, scalar_prefetch = 0 : i64, scratch_operands = 0 : i64, tpu.core_type = #tpu.core_type<tc>, window_params = [{transform_indices = @transform_0, window_bounds = array<i64: 1, 4, 512>}, {pipeline_mode = #tpu.pipeline_mode<synchronous>, transform_indices = @transform_1, window_bounds = array<i64: 4, 4>}, {pipeline_mode = #tpu.pipeline_mode<synchronous>, transform_indices = @transform_2, window_bounds = array<i64: 4, 1>}, {pipeline_mode = #tpu.pipeline_mode<synchronous>, transform_indices = @transform_3, window_bounds = array<i64: 8, 4>}, {pipeline_mode = #tpu.pipeline_mode<synchronous>, transform_indices = @transform_4, window_bounds = array<i64: 8, 1>}, {pipeline_mode = #tpu.pipeline_mode<synchronous>, transform_indices = @transform_5, window_bounds = array<i64: 8, 4>}, {transform_indices = @transform_6, window_bounds = array<i64: 1, 8, 512>}]} {
    %c0 = arith.constant 0 : index
    %c0_0 = arith.constant 0 : index
    %c0_1 = arith.constant 0 : index
    %0 = vector.load %arg2[%c0, %c0_0, %c0_1] : memref<1x4x512xf32, #tpu.memory_space<vmem>>, vector<1x4x512xf32>
    %1 = vector.shape_cast %0 : vector<1x4x512xf32> to vector<4x512xf32>
    %cst = arith.constant 0.000000e+00 : f32
    %2 = vector.broadcast %cst : f32 to vector<4x512xf32>
    %3 = arith.maximumf %1, %2 : vector<4x512xf32>
    %c0_2 = arith.constant 0 : index
    %c0_3 = arith.constant 0 : index
    %4 = vector.load %arg3[%c0_2, %c0_3] : memref<4x4xf32, #tpu.memory_space<vmem>>, vector<4x4xf32>
    %cst_4 = arith.constant dense<0.000000e+00> : vector<4x512xf32>
    %5 = tpu.matmul %4, %3, %cst_4 {dimension_numbers = #tpu.dot_dimension_numbers<[1], [0], [0], [1], [0, 0, 1, 1], [], []>} : vector<4x4xf32>, vector<4x512xf32>, vector<4x512xf32> -> vector<4x512xf32>
    %c0_5 = arith.constant 0 : index
    %c0_6 = arith.constant 0 : index
    %6 = vector.load %arg4[%c0_5, %c0_6] : memref<4x1xf32, #tpu.memory_space<vmem>>, vector<4x1xf32>
    %7 = vector.broadcast %6 : vector<4x1xf32> to vector<4x512xf32>
    %8 = arith.addf %5, %7 : vector<4x512xf32>
    %cst_7 = arith.constant 0.000000e+00 : f32
    %9 = vector.broadcast %cst_7 : f32 to vector<4x512xf32>
    %10 = arith.maximumf %8, %9 : vector<4x512xf32>
    %c0_8 = arith.constant 0 : index
    %c0_9 = arith.constant 0 : index
    %11 = vector.load %arg5[%c0_8, %c0_9] : memref<8x4xf32, #tpu.memory_space<vmem>>, vector<8x4xf32>
    %cst_10 = arith.constant dense<0.000000e+00> : vector<8x512xf32>
    %12 = tpu.matmul %11, %10, %cst_10 {dimension_numbers = #tpu.dot_dimension_numbers<[1], [0], [0], [1], [0, 0, 1, 1], [], []>} : vector<8x4xf32>, vector<4x512xf32>, vector<8x512xf32> -> vector<8x512xf32>
    %c0_11 = arith.constant 0 : index
    %c0_12 = arith.constant 0 : index
    %13 = vector.load %arg6[%c0_11, %c0_12] : memref<8x1xf32, #tpu.memory_space<vmem>>, vector<8x1xf32>
    %14 = vector.broadcast %13 : vector<8x1xf32> to vector<8x512xf32>
    %15 = arith.addf %12, %14 : vector<8x512xf32>
    %c0_13 = arith.constant 0 : index
    %c0_14 = arith.constant 0 : index
    %16 = vector.load %arg7[%c0_13, %c0_14] : memref<8x4xf32, #tpu.memory_space<vmem>>, vector<8x4xf32>
    %cst_15 = arith.constant dense<0.000000e+00> : vector<8x512xf32>
    %17 = tpu.matmul %16, %1, %cst_15 {dimension_numbers = #tpu.dot_dimension_numbers<[1], [0], [0], [1], [0, 0, 1, 1], [], []>} : vector<8x4xf32>, vector<4x512xf32>, vector<8x512xf32> -> vector<8x512xf32>
    %18 = arith.addf %17, %15 : vector<8x512xf32>
    %c0_16 = arith.constant 0 : index
    %c0_17 = arith.constant 0 : index
    %c0_18 = arith.constant 0 : index
    %19 = vector.load %arg8[%c0_16, %c0_17, %c0_18] : memref<1x8x512xf32, #tpu.memory_space<vmem>>, vector<1x8x512xf32>
    %20 = vector.shape_cast %19 : vector<1x8x512xf32> to vector<8x512xf32>
    %21 = vector.shape_cast %18 : vector<8x512xf32> to vector<1x8x512xf32>
    tpu.vector_store %arg8[%c0_16, %c0_17, %c0_18], %21 {strides = array<i32>} : memref<1x8x512xf32, #tpu.memory_space<vmem>>, vector<1x8x512xf32>,
    return
  }
  func.func @transform_0(%arg0: i32, %arg1: i32) -> (i32, i32, i32) {
    %c0_i32 = arith.constant 0 : i32
    %c0_i32_0 = arith.constant 0 : i32
    return %arg0, %c0_i32, %arg1 : i32, i32, i32
  }
  func.func @transform_1(%arg0: i32, %arg1: i32) -> (i32, i32) {
    %c0_i32 = arith.constant 0 : i32
    %c0_i32_0 = arith.constant 0 : i32
    %c0_i32_1 = arith.constant 0 : i32
    return %c0_i32, %c0_i32_0 : i32, i32
  }
  func.func @transform_2(%arg0: i32, %arg1: i32) -> (i32, i32) {
    %c0_i32 = arith.constant 0 : i32
    %c0_i32_0 = arith.constant 0 : i32
    %c0_i32_1 = arith.constant 0 : i32
    return %c0_i32, %c0_i32_0 : i32, i32
  }
  func.func @transform_3(%arg0: i32, %arg1: i32) -> (i32, i32) {
    %c0_i32 = arith.constant 0 : i32
    %c0_i32_0 = arith.constant 0 : i32
    %c0_i32_1 = arith.constant 0 : i32
    return %c0_i32, %c0_i32_0 : i32, i32
  }
  func.func @transform_4(%arg0: i32, %arg1: i32) -> (i32, i32) {
    %c0_i32 = arith.constant 0 : i32
    %c0_i32_0 = arith.constant 0 : i32
    %c0_i32_1 = arith.constant 0 : i32
    return %c0_i32, %c0_i32_0 : i32, i32
  }
  func.func @transform_5(%arg0: i32, %arg1: i32) -> (i32, i32) {
    %c0_i32 = arith.constant 0 : i32
    %c0_i32_0 = arith.constant 0 : i32
    %c0_i32_1 = arith.constant 0 : i32
    return %c0_i32, %c0_i32_0 : i32, i32
  }
  func.func @transform_6(%arg0: i32, %arg1: i32) -> (i32, i32, i32) {
    %c0_i32 = arith.constant 0 : i32
    %c0_i32_0 = arith.constant 0 : i32
    return %arg0, %c0_i32, %arg1 : i32, i32, i32
  }
}

</mosaic_0001>

<bundles_post_ra>
// kernel: tpu_custom_call.1
= control target key start
LH: loop header
LB: loop body
LE: loop exit
PB: predicated region body
PF: predicated region fallthrough
CT: control target
= control target key end

     0   :  { %11 = vsyncpa [#allocation3], 0  ;;  %s1308_s0 = inlined_call_operand.vmem [shape: f32[2,4,512], index: 0, kind: input, shape index: {}]   ;;  %s1309_s1 = inlined_call_operand.hbm [shape: f32[4,4], index: 1, kind: input, shape index: {}]   ;;  %s1310_s2 = inlined_call_operand.vmem [shape: f32[4,1], index: 2, kind: input, shape index: {}]   ;;  %s1311_s3 = inlined_call_operand.vmem [shape: f32[8,4], index: 3, kind: input, shape index: {}]   ;;  %s1312_s4 = inlined_call_operand.vmem [shape: f32[8,1], index: 4, kind: input, shape index: {}]   ;;  %s1313_s5 = inlined_call_operand.vmem [shape: f32[8,4], index: 5, kind: input, shape index: {}]   ;;  %s1314_s6 = inlined_call_operand.hbm [shape: f32[2,8,512], index: 6, kind: output, shape index: {}]  }
   0x1   :  { %12 = vsyncpa [#allocation4], 0 }
   0x2   :  { %14 = vsyncpa [#allocation4 + $0x1], 0  ;;  %s1152_s21 = smov 0   ;;  %s1154_s22 = smov 0  }
   0x3   :  { %s1156_s23 = smov 0   ;;  %s1158_s24 = smov 0  }
   0x4   :  { %s1160_s25 = smov 0   ;;  %s1162_s26 = smov 0  }
   0x5 LB: > { %s899_s27 = sadd.s32 4294967295, %s1111_s26   ;;  %s900_s28 = sadd.s32 4294967294, %s1111_s26   ;;  %s1111_s26 = sphi %s1162_s26, %s20_s26   ;;  %s1107_s25 = sphi %s1160_s25, %s1323_s25   ;;  %s1103_s24 = sphi %s1158_s24, %s1322_s24   ;;  %s1099_s23 = sphi %s1156_s23, %s1321_s23   ;;  %s1095_s22 = sphi %s1154_s22, %s1320_s22   ;;  %s1091_s21 = sphi %s1152_s21, %s1319_s21  }
   0x6   : > { %s32_s29 = sadd.s32 1, %s1107_s25  ;;  %s174_s30 = sadd.s32 1, %s1099_s23 }
   0x7   : > { %p34_p0 = scmp.ge.s32.totalorder %s32_s29, 2  ;;  %p184_p1 = scmp.ne.s32.totalorder %s1099_s23, %s1095_s22 }
   0x8   : > { %p185_p2 = scmp.eq.s32.totalorder %s899_s27, 1  ;;  %p190_p3 = scmp.ne.s32.totalorder %s1095_s22, %s1091_s21 }
   0x9   : > { %s1325_s29 = smov (%p34_p0, %s32_s29), 0  ;;  %p191_p5 = scmp.eq.s32.totalorder %s900_s28, 1 }
   0xa   : > { %p1192_p4 = por %p185_p2, %p184_p1  ;;  %s169_s8 = ssub.s32 %s1107_s25, %s1325_s29 }
   0xb   : > { %p901_p6 = scmp.ge.s32.totalorder %s1111_s26, 1  ;;  %p172_p7 = scmp.eq.s32.totalorder %s169_s8, 0 }
   0xc   : > { %p1199_p8 = por %p191_p5, %p190_p3  ;;  %p198_p9 = scmp.lt.s32.totalorder %s1111_s26, 3 }
   0xd   : > { %s1205_s10 = scalar_select %p172_p7, %s1099_s23, %s174_s30  }
   0xe   : > { %p1207_p10 = pnand %p901_p6, %p198_p9  ;;  %p1211_p11 = scmp.eq.s32.totalorder %s899_s27, 0 }
   0xf   : > { %s1113_s13 = smov [#allocation2]  }
  0x10   : > { %p940_p12 = pneg %p1207_p10  ;;  %s211_s14 = sshll.u32 %s1113_s13, 4  ;;  %s212_s14 = int_to_ptr.vmem [resolvable:$true] %s211_s14 }
  0x11   : > { %s1016_s15 = scalar_lea.vmem %s212_s14, 64  ;;  %p1024_p5 = scmp.lt.s32.totalorder %s212_s14, %s212_s14 }
  0x12   : > { %p941_p13 = pnand %p1211_p11, %p940_p12  ;;  %p1017_p1 = scmp.ne.s32.totalorder %s212_s14, %s1016_s15 }
  0x13   : > { %p1025_p6 = scmp.lt.s32.totalorder %s1016_s15, %s1016_s15 }
  0x14   : > { %p1007_p0 = pneg %p941_p13 }
  0x15   : > { %p1026_p7 = por %p1025_p6, %p1024_p5 }
  0x16   : > { %p1019_p2 = pnand %p1017_p1, %p1007_p0 }
  0x18   : > { %p1020_p3 = pneg %p1019_p2 }
  0x1a   : > { %p1027_p9 = pnand %p1026_p7, %p1020_p3 }
  0x1c   : > { %1030 = shalt.err (!%p1027_p9)
}
  0x1d   : > { %943 = dma.hbm_to_vmem [thread:$0]  (!%p941_p13), %s1309_s1, 64, %s212_s14, [#allocation3]  }
  0x1e   : > { %249 = sbr.rel (%p1207_p10) target bundleno = 464 (0x1d0), region = 44 }
  0x23   : > { %1082 = dma.done.wait (%p1211_p11), [#allocation3], 64  }
  0x24   : > { %1084 = vsyncadd (%p1211_p11), [#allocation3], 4294967232  ;;  %p284_p12 = scmp.lt.s32.totalorder %s1103_s24, 1  ;;  %v1114_v0 = vmov 0.0   ;;  %v1115_v1 = vmov 0   ;;  %vm313_vm0 = vcmask 1043456  }
  0x25   : > { %386 = vmatprep.mubr.f32.mxu0 %v1114_v0  ;;  %457 = vmatprep.mubr.f32.mxu1 %v1114_v0  ;;  %v299_v6 = vld [vmem:[%s1310_s2] sm:$0xf]  ;;  %vm309_vm1 = vcmask 31744   ;;  %s280_s17 = sand.u32 1, %s1095_s22   ;;  %s1116_s12 = smov [#allocation5]  }
  0x26   : > { %s285_s18 = scalar_select %p284_p12, %s1103_s24, 1  ;;  %1002 = vset.pattern.permute.xlu0 %v1115_v1  ;;  %v298_v9 = vld [vmem:[#allocation2] sm:$0xf] }
  0x27   : > { %302 = vperm.xlu0 %1002, %v299_v6   ;;  %v469_v10 = vld [vmem:[%s1312_s4] sm:$0xff]  ;;  %s1035_s13 = sshll.u32 %s1116_s12, 4  ;;  %s1036_s13 = int_to_ptr.vmem [resolvable:$false] %s1035_s13 }
  0x28   : > { %s932_s19 = sshll.u32 %s285_s18, 4  ;;  %v468_v24 = vld [vmem:[%s1311_s3] sm:$0xff]  ;;  %s906_s18 = sshll.u32 %s280_s17, 5 }
  0x29   : > { %s291_s28 = scalar_lea.vmem %s1308_s0, %s932_s19  ;;  %v632_v27 = vld [vmem:[%s1313_s5] sm:$0xff]  ;;  %s933_s19 = sshll.u32 %s1103_s24, 9 }
  0x2a   : > { %v294_v2 = vld [vmem:[%s291_s28] sm:$0xff]  ;;  %v295_v3 = vld [vmem:[%s291_s28 + $0x8] sm:$0xff]  ;;  %s282_s20 = scalar_lea.vmem [#allocation5], %s906_s18  ;;  %s1268_s8 = scalar_lea.hbm %s1314_s6, %s933_s19 }
  0x2b   : > { %v296_v4 = vmax.f32 %v294_v2, 0.0  ;;  %v297_v5 = vmax.f32 %v295_v3, 0.0  ;;  %472 = vperm.xlu0 %1002, %v469_v10   ;;  %v635_v25 = vcombine.high %v294_v2, %v294_v2  ;;  %v636_v26 = vcombine.high %v295_v3, %v295_v3  ;;  %s811_s27 = sshll.u32 %s282_s20, 4  ;;  %s795_s24 = scalar_lea.sflag [#allocation4], %s280_s17  ;;  %s812_s27 = int_to_ptr.vmem [resolvable:$true] %s811_s27 }
  0x2c   : > { %s1031_s11 = scalar_lea.vmem %s812_s27, 512  ;;  %s1037_s14 = scalar_lea.vmem %s1036_s13, 1024 }
  0x2d   : > { %v307_v7 = vcombine.high %v296_v4, %v296_v4  ;;  %v308_v8 = vcombine.high %v297_v5, %v297_v5  ;;  %p1032_p10 = scmp.ne.s32.totalorder %s812_s27, %s1031_s11  ;;  %p1038_p0 = scmp.lt.s32.totalorder %s812_s27, %s1036_s13 }
  0x2e   : > { %p1039_p1 = scmp.lt.s32.totalorder %s1037_s14, %s1031_s11 }
  0x2f   : > { %909 = vmatprep.subr.msk.mxu0 %vm313_vm0, %v307_v7  ;;  %912 = vmatprep.subr.msk.mxu1 %vm313_vm0, %v308_v8  ;;  %p1033_p11 = pnand %p1032_p10, %p1192_p4 }
  0x30   : > { %910 = vmatpush1.msk.msra.mxu0 %vm313_vm0, %v296_v4  ;;  %913 = vmatpush1.msk.msra.mxu1 %vm313_vm0, %v297_v5  ;;  %p1040_p2 = por %p1039_p1, %p1038_p0 }
  0x31   : > { %911 = vmatmul.mubr.msk.f32.vlgmr.msra.gmra.mxu0 %vm309_vm1, %v298_v9  ;;  %914 = vmatmul.mubr.msk.f32.vlgmr.msra.gmra.mxu1 %vm309_vm1, %v298_v9  ;;  %p1034_p13 = pneg %p1033_p11 }
  0x32   : > { %554 = vmatprep.mubr.f32.mxu0 %v1114_v0  ;;  %625 = vmatprep.mubr.f32.mxu1 %v1114_v0 }
  0x33   : > { %p1041_p3 = pnand %p1040_p2, %p1034_p13 }
  0xa2   : > { %v303_v13 = vpop.permute.xlu0 %302 }
  0xa6   : > { %v473_v30 = vpop.permute.xlu0 %472 }
  0xf1   : > { %v388_v11 = vpop.f32.mrf.mxu0  ;;  %v459_v12 = vpop.f32.mrf.mxu1 }
  0xf2   : > { %v389_v14 = vadd.f32 %v388_v11, %v303_v13  ;;  %v460_v15 = vadd.f32 %v459_v12, %v303_v13 }
  0xf3   : > { %v390_v16 = vpop.f32.mrf.mxu0  ;;  %v461_v17 = vpop.f32.mrf.mxu1 }
  0xf4   : > { %v391_v18 = vadd.f32 %v390_v16, %v303_v13  ;;  %v462_v19 = vadd.f32 %v461_v17, %v303_v13  ;;  %v464_v22 = vmax.f32 %v389_v14, 0.0  ;;  %v466_v23 = vmax.f32 %v460_v15, 0.0 }
  0xf6   : > { %v465_v20 = vmax.f32 %v391_v18, 0.0  ;;  %v467_v21 = vmax.f32 %v462_v19, 0.0 }
  0xf8   : > { %915 = vmatprep.subr.msk.mxu0 %vm313_vm0, %v465_v20  ;;  %918 = vmatprep.subr.msk.mxu1 %vm313_vm0, %v467_v21 }
  0xf9   : > { %916 = vmatpush1.msk.msra.mxu0 %vm313_vm0, %v464_v22  ;;  %919 = vmatpush1.msk.msra.mxu1 %vm313_vm0, %v466_v23 }
  0xfa   : > { %917 = vmatmul.mubr.msk.f32.vlgmr.msra.gmra.mxu0 %vm309_vm1, %v468_v24  ;;  %920 = vmatmul.mubr.msk.f32.vlgmr.msra.gmra.mxu1 %vm309_vm1, %v468_v24 }
  0xfb   : > { %921 = vmatprep.subr.msk.mxu0 %vm313_vm0, %v635_v25  ;;  %924 = vmatprep.subr.msk.mxu1 %vm313_vm0, %v636_v26 }
  0xfc   : > { %922 = vmatpush1.msk.msra.mxu0 %vm313_vm0, %v294_v2  ;;  %712 = vmatprep.mubr.f32.mxu0 %v1114_v0 }
  0xfd   : > { %925 = vmatpush1.msk.msra.mxu1 %vm313_vm0, %v295_v3  ;;  %783 = vmatprep.mubr.f32.mxu1 %v1114_v0 }
  0xfe   : > { %923 = vmatmul.mubr.msk.f32.vlgmr.msra.gmra.mxu0 %vm309_vm1, %v632_v27  ;;  %926 = vmatmul.mubr.msk.f32.vlgmr.msra.gmra.mxu1 %vm309_vm1, %v632_v27 }
 0x1ba   : > { %v556_v28 = vpop.f32.mrf.mxu0  ;;  %v627_v29 = vpop.f32.mrf.mxu1 }
 0x1bb   : > { %v557_v33 = vadd.f32 %v556_v28, %v473_v30  ;;  %v628_v34 = vadd.f32 %v627_v29, %v473_v30 }
 0x1bc   : > { %v558_v31 = vpop.f32.mrf.mxu0  ;;  %v629_v32 = vpop.f32.mrf.mxu1 }
 0x1bd   : > { %v559_v37 = vadd.f32 %v558_v31, %v473_v30  ;;  %v630_v38 = vadd.f32 %v629_v32, %v473_v30 }
 0x1be   : > { %v714_v35 = vpop.f32.mrf.mxu0  ;;  %v785_v36 = vpop.f32.mrf.mxu1 }
 0x1bf   : > { %v715_v39 = vadd.f32 %v714_v35, %v557_v33  ;;  %v786_v40 = vadd.f32 %v785_v36, %v628_v34 }
 0x1c0   : > { %v716_v41 = vpop.f32.mrf.mxu0  ;;  %v787_v42 = vpop.f32.mrf.mxu1 }
 0x1c1   : > { %790 = vst [vmem:[%s282_s20] sm:$0xff] %v715_v39  ;;  %792 = vst [vmem:[%s282_s20 + $0x10] sm:$0xff] %v786_v40  ;;  %v717_v43 = vadd.f32 %v716_v41, %v559_v37  ;;  %v788_v44 = vadd.f32 %v787_v42, %v630_v38 }
 0x1c3   : > { %791 = vst [vmem:[%s282_s20 + $0x8] sm:$0xff] %v717_v43  ;;  %793 = vst [vmem:[%s282_s20 + $0x18] sm:$0xff] %v788_v44 }
 0x1c4   : > { %1044 = shalt.err (!%p1041_p3)
}
 0x1c5   : > { %s1045_s15 = scalar_lea.hbm %s1268_s8, 512  ;;  %s1049_s18 = scalar_lea.hbm %s1314_s6, 1024 }
 0x1c6   : > { %p1046_p5 = scmp.ne.s32.totalorder %s1268_s8, %s1045_s15  ;;  %p1050_p9 = scmp.lt.s32.totalorder %s1268_s8, %s1314_s6 }
 0x1c7   : > { %p1051_p12 = scmp.lt.s32.totalorder %s1049_s18, %s1045_s15 }
 0x1c8   : > { %p1047_p6 = pnand %p1046_p5, %p1192_p4 }
 0x1c9   : > { %p1052_p10 = por %p1051_p12, %p1050_p9 }
 0x1ca   : > { %p1048_p7 = pneg %p1047_p6 }
 0x1cc   : > { %p1053_p11 = pnand %p1052_p10, %p1048_p7 }
 0x1ce   : > { %1056 = shalt.err (!%p1053_p11)
}
 0x1cf   : > { %938 = dma.vmem_to_hbm [thread:$0]  (%p1192_p4), %s812_s27, 512, %s1268_s8, %s795_s24  }
 0x1d0 PF: > { %p950_p13 = scmp.ge.s32.totalorder %s1111_s26, 2  ;;  %s823_s28 = sand.u32 1, %s1091_s21  }
 0x1d1   : > { %s824_s30 = scalar_lea.sflag [#allocation4], %s823_s28 }
 0x1d2   : > { %p945_p0 = pnand %p950_p13, %p1199_p8 }
 0x1d4   : > { %p946_p1 = pneg %p945_p0 }
 0x1d6   : > { %1086 = dma.done.wait (%p946_p1), %s824_s30, 512  }
 0x1d7   : > { %1088 = vsyncadd (%p946_p1), %s824_s30, 4294966784  ;;  %s20_s26 = sadd.s32 1, %s1111_s26   ;;  %s1319_s21 = smov %s1095_s22 }
 0x1d8   : > { %p17_p2 = scmp.ge.s32.totalorder %s20_s26, 4   ;;  %s1320_s22 = smov %s1099_s23 }
 0x1d9   : > { %s1321_s23 = smov %s1205_s10  ;;  %s1322_s24 = smov %s1107_s25 }
 0x1da   : > { %s1323_s25 = smov %s1325_s29  ;;  %19 = sbr.rel (!%p17_p2) target bundleno = 5 (0x5), region = 84 }
 0x1df   :  { %829 = vsyncpa [#allocation3], 1 }
 0x1e0   :  { %831 = vsyncpa [#allocation3 + $0x1], 1 }
 0x1e1   :  { %832 = vsyncpa [#allocation4], 1 }
 0x1e2   :  { %834 = vsyncpa [#allocation4 + $0x1], 1 }

// kernel: tpu_custom_call.1
= control target key start
LH: loop header
LB: loop body
LE: loop exit
PB: predicated region body
PF: predicated region fallthrough
CT: control target
= control target key end

     0   :  { %11 = vsyncpa [#allocation3], 0  ;;  %s1308_s0 = inlined_call_operand.vmem [shape: f32[2,4,512], index: 0, kind: input, shape index: {}]   ;;  %s1309_s1 = inlined_call_operand.hbm [shape: f32[4,4], index: 1, kind: input, shape index: {}]   ;;  %s1310_s2 = inlined_call_operand.vmem [shape: f32[4,1], index: 2, kind: input, shape index: {}]   ;;  %s1311_s3 = inlined_call_operand.vmem [shape: f32[8,4], index: 3, kind: input, shape index: {}]   ;;  %s1312_s4 = inlined_call_operand.vmem [shape: f32[8,1], index: 4, kind: input, shape index: {}]   ;;  %s1313_s5 = inlined_call_operand.vmem [shape: f32[8,4], index: 5, kind: input, shape index: {}]   ;;  %s1314_s6 = inlined_call_operand.hbm [shape: f32[2,8,512], index: 6, kind: output, shape index: {}]  }
   0x1   :  { %12 = vsyncpa [#allocation4], 0 }
   0x2   :  { %14 = vsyncpa [#allocation4 + $0x1], 0  ;;  %s1152_s21 = smov 0   ;;  %s1154_s22 = smov 0  }
   0x3   :  { %s1156_s23 = smov 0   ;;  %s1158_s24 = smov 0  }
   0x4   :  { %s1160_s25 = smov 0   ;;  %s1162_s26 = smov 0  }
   0x5 LB: > { %s899_s27 = sadd.s32 4294967295, %s1111_s26   ;;  %s900_s28 = sadd.s32 4294967294, %s1111_s26   ;;  %s1111_s26 = sphi %s1162_s26, %s20_s26   ;;  %s1107_s25 = sphi %s1160_s25, %s1323_s25   ;;  %s1103_s24 = sphi %s1158_s24, %s1322_s24   ;;  %s1099_s23 = sphi %s1156_s23, %s1321_s23   ;;  %s1095_s22 = sphi %s1154_s22, %s1320_s22   ;;  %s1091_s21 = sphi %s1152_s21, %s1319_s21  }
   0x6   : > { %s32_s29 = sadd.s32 1, %s1107_s25  ;;  %s174_s30 = sadd.s32 1, %s1099_s23 }
   0x7   : > { %p34_p0 = scmp.ge.s32.totalorder %s32_s29, 2  ;;  %p184_p1 = scmp.ne.s32.totalorder %s1099_s23, %s1095_s22 }
   0x8   : > { %p185_p2 = scmp.eq.s32.totalorder %s899_s27, 1  ;;  %p190_p3 = scmp.ne.s32.totalorder %s1095_s22, %s1091_s21 }
   0x9   : > { %s1325_s29 = smov (%p34_p0, %s32_s29), 0  ;;  %p191_p5 = scmp.eq.s32.totalorder %s900_s28, 1 }
   0xa   : > { %p1192_p4 = por %p185_p2, %p184_p1  ;;  %s169_s8 = ssub.s32 %s1107_s25, %s1325_s29 }
   0xb   : > { %p901_p6 = scmp.ge.s32.totalorder %s1111_s26, 1  ;;  %p172_p7 = scmp.eq.s32.totalorder %s169_s8, 0 }
   0xc   : > { %p1199_p8 = por %p191_p5, %p190_p3  ;;  %p198_p9 = scmp.lt.s32.totalorder %s1111_s26, 3 }
   0xd   : > { %s1205_s10 = scalar_select %p172_p7, %s1099_s23, %s174_s30  }
   0xe   : > { %p1207_p10 = pnand %p901_p6, %p198_p9  ;;  %p1211_p11 = scmp.eq.s32.totalorder %s899_s27, 0 }
   0xf   : > { %s1113_s13 = smov [#allocation2]  }
  0x10   : > { %p940_p12 = pneg %p1207_p10  ;;  %s211_s14 = sshll.u32 %s1113_s13, 4  ;;  %s212_s14 = int_to_ptr.vmem [resolvable:$true] %s211_s14 }
  0x11   : > { %s1016_s15 = scalar_lea.vmem %s212_s14, 64  ;;  %p1024_p5 = scmp.lt.s32.totalorder %s212_s14, %s212_s14 }
  0x12   : > { %p941_p13 = pnand %p1211_p11, %p940_p12  ;;  %p1017_p1 = scmp.ne.s32.totalorder %s212_s14, %s1016_s15 }
  0x13   : > { %p1025_p6 = scmp.lt.s32.totalorder %s1016_s15, %s1016_s15 }
  0x14   : > { %p1007_p0 = pneg %p941_p13 }
  0x15   : > { %p1026_p7 = por %p1025_p6, %p1024_p5 }
  0x16   : > { %p1019_p2 = pnand %p1017_p1, %p1007_p0 }
  0x18   : > { %p1020_p3 = pneg %p1019_p2 }
  0x1a   : > { %p1027_p9 = pnand %p1026_p7, %p1020_p3 }
  0x1c   : > { %1030 = shalt.err (!%p1027_p9)
}
  0x1d   : > { %943 = dma.hbm_to_vmem [thread:$0]  (!%p941_p13), %s1309_s1, 64, %s212_s14, [#allocation3]  }
  0x1e   : > { %249 = sbr.rel (%p1207_p10) target bundleno = 464 (0x1d0), region = 44 }
  0x23   : > { %1082 = dma.done.wait (%p1211_p11), [#allocation3], 64  }
  0x24   : > { %1084 = vsyncadd (%p1211_p11), [#allocation3], 4294967232  ;;  %p284_p12 = scmp.lt.s32.totalorder %s1103_s24, 1  ;;  %v1114_v0 = vmov 0.0   ;;  %v1115_v1 = vmov 0   ;;  %vm313_vm0 = vcmask 1043456  }
  0x25   : > { %386 = vmatprep.mubr.f32.mxu0 %v1114_v0  ;;  %457 = vmatprep.mubr.f32.mxu1 %v1114_v0  ;;  %v299_v6 = vld [vmem:[%s1310_s2] sm:$0xf]  ;;  %vm309_vm1 = vcmask 31744   ;;  %s280_s17 = sand.u32 1, %s1095_s22   ;;  %s1116_s12 = smov [#allocation5]  }
  0x26   : > { %s285_s18 = scalar_select %p284_p12, %s1103_s24, 1  ;;  %1002 = vset.pattern.permute.xlu0 %v1115_v1  ;;  %v298_v9 = vld [vmem:[#allocation2] sm:$0xf] }
  0x27   : > { %302 = vperm.xlu0 %1002, %v299_v6   ;;  %v469_v10 = vld [vmem:[%s1312_s4] sm:$0xff]  ;;  %s1035_s13 = sshll.u32 %s1116_s12, 4  ;;  %s1036_s13 = int_to_ptr.vmem [resolvable:$false] %s1035_s13 }
  0x28   : > { %s932_s19 = sshll.u32 %s285_s18, 4  ;;  %v468_v24 = vld [vmem:[%s1311_s3] sm:$0xff]  ;;  %s906_s18 = sshll.u32 %s280_s17, 5 }
  0x29   : > { %s291_s28 = scalar_lea.vmem %s1308_s0, %s932_s19  ;;  %v632_v27 = vld [vmem:[%s1313_s5] sm:$0xff]  ;;  %s933_s19 = sshll.u32 %s1103_s24, 9 }
  0x2a   : > { %v294_v2 = vld [vmem:[%s291_s28] sm:$0xff]  ;;  %v295_v3 = vld [vmem:[%s291_s28 + $0x8] sm:$0xff]  ;;  %s282_s20 = scalar_lea.vmem [#allocation5], %s906_s18  ;;  %s1268_s8 = scalar_lea.hbm %s1314_s6, %s933_s19 }
  0x2b   : > { %v296_v4 = vmax.f32 %v294_v2, 0.0  ;;  %v297_v5 = vmax.f32 %v295_v3, 0.0  ;;  %472 = vperm.xlu0 %1002, %v469_v10   ;;  %v635_v25 = vcombine.high %v294_v2, %v294_v2  ;;  %v636_v26 = vcombine.high %v295_v3, %v295_v3  ;;  %s811_s27 = sshll.u32 %s282_s20, 4  ;;  %s795_s24 = scalar_lea.sflag [#allocation4], %s280_s17  ;;  %s812_s27 = int_to_ptr.vmem [resolvable:$true] %s811_s27 }
  0x2c   : > { %s1031_s11 = scalar_lea.vmem %s812_s27, 512  ;;  %s1037_s14 = scalar_lea.vmem %s1036_s13, 1024 }
  0x2d   : > { %v307_v7 = vcombine.high %v296_v4, %v296_v4  ;;  %v308_v8 = vcombine.high %v297_v5, %v297_v5  ;;  %p1032_p10 = scmp.ne.s32.totalorder %s812_s27, %s1031_s11  ;;  %p1038_p0 = scmp.lt.s32.totalorder %s812_s27, %s1036_s13 }
  0x2e   : > { %p1039_p1 = scmp.lt.s32.totalorder %s1037_s14, %s1031_s11 }
  0x2f   : > { %909 = vmatprep.subr.msk.mxu0 %vm313_vm0, %v307_v7  ;;  %912 = vmatprep.subr.msk.mxu1 %vm313_vm0, %v308_v8  ;;  %p1033_p11 = pnand %p1032_p10, %p1192_p4 }
  0x30   : > { %910 = vmatpush1.msk.msra.mxu0 %vm313_vm0, %v296_v4  ;;  %913 = vmatpush1.msk.msra.mxu1 %vm313_vm0, %v297_v5  ;;  %p1040_p2 = por %p1039_p1, %p1038_p0 }
  0x31   : > { %911 = vmatmul.mubr.msk.f32.vlgmr.msra.gmra.mxu0 %vm309_vm1, %v298_v9  ;;  %914 = vmatmul.mubr.msk.f32.vlgmr.msra.gmra.mxu1 %vm309_vm1, %v298_v9  ;;  %p1034_p13 = pneg %p1033_p11 }
  0x32   : > { %554 = vmatprep.mubr.f32.mxu0 %v1114_v0  ;;  %625 = vmatprep.mubr.f32.mxu1 %v1114_v0 }
  0x33   : > { %p1041_p3 = pnand %p1040_p2, %p1034_p13 }
  0xa2   : > { %v303_v13 = vpop.permute.xlu0 %302 }
  0xa6   : > { %v473_v30 = vpop.permute.xlu0 %472 }
  0xf1   : > { %v388_v11 = vpop.f32.mrf.mxu0  ;;  %v459_v12 = vpop.f32.mrf.mxu1 }
  0xf2   : > { %v389_v14 = vadd.f32 %v388_v11, %v303_v13  ;;  %v460_v15 = vadd.f32 %v459_v12, %v303_v13 }
  0xf3   : > { %v390_v16 = vpop.f32.mrf.mxu0  ;;  %v461_v17 = vpop.f32.mrf.mxu1 }
  0xf4   : > { %v391_v18 = vadd.f32 %v390_v16, %v303_v13  ;;  %v462_v19 = vadd.f32 %v461_v17, %v303_v13  ;;  %v464_v22 = vmax.f32 %v389_v14, 0.0  ;;  %v466_v23 = vmax.f32 %v460_v15, 0.0 }
  0xf6   : > { %v465_v20 = vmax.f32 %v391_v18, 0.0  ;;  %v467_v21 = vmax.f32 %v462_v19, 0.0 }
  0xf8   : > { %915 = vmatprep.subr.msk.mxu0 %vm313_vm0, %v465_v20  ;;  %918 = vmatprep.subr.msk.mxu1 %vm313_vm0, %v467_v21 }
  0xf9   : > { %916 = vmatpush1.msk.msra.mxu0 %vm313_vm0, %v464_v22  ;;  %919 = vmatpush1.msk.msra.mxu1 %vm313_vm0, %v466_v23 }
  0xfa   : > { %917 = vmatmul.mubr.msk.f32.vlgmr.msra.gmra.mxu0 %vm309_vm1, %v468_v24  ;;  %920 = vmatmul.mubr.msk.f32.vlgmr.msra.gmra.mxu1 %vm309_vm1, %v468_v24 }
  0xfb   : > { %921 = vmatprep.subr.msk.mxu0 %vm313_vm0, %v635_v25  ;;  %924 = vmatprep.subr.msk.mxu1 %vm313_vm0, %v636_v26 }
  0xfc   : > { %922 = vmatpush1.msk.msra.mxu0 %vm313_vm0, %v294_v2  ;;  %712 = vmatprep.mubr.f32.mxu0 %v1114_v0 }
  0xfd   : > { %925 = vmatpush1.msk.msra.mxu1 %vm313_vm0, %v295_v3  ;;  %783 = vmatprep.mubr.f32.mxu1 %v1114_v0 }
  0xfe   : > { %923 = vmatmul.mubr.msk.f32.vlgmr.msra.gmra.mxu0 %vm309_vm1, %v632_v27  ;;  %926 = vmatmul.mubr.msk.f32.vlgmr.msra.gmra.mxu1 %vm309_vm1, %v632_v27 }
 0x1ba   : > { %v556_v28 = vpop.f32.mrf.mxu0  ;;  %v627_v29 = vpop.f32.mrf.mxu1 }
 0x1bb   : > { %v557_v33 = vadd.f32 %v556_v28, %v473_v30  ;;  %v628_v34 = vadd.f32 %v627_v29, %v473_v30 }
 0x1bc   : > { %v558_v31 = vpop.f32.mrf.mxu0  ;;  %v629_v32 = vpop.f32.mrf.mxu1 }
 0x1bd   : > { %v559_v37 = vadd.f32 %v558_v31, %v473_v30  ;;  %v630_v38 = vadd.f32 %v629_v32, %v473_v30 }
 0x1be   : > { %v714_v35 = vpop.f32.mrf.mxu0  ;;  %v785_v36 = vpop.f32.mrf.mxu1 }
 0x1bf   : > { %v715_v39 = vadd.f32 %v714_v35, %v557_v33  ;;  %v786_v40 = vadd.f32 %v785_v36, %v628_v34 }
 0x1c0   : > { %v716_v41 = vpop.f32.mrf.mxu0  ;;  %v787_v42 = vpop.f32.mrf.mxu1 }
 0x1c1   : > { %790 = vst [vmem:[%s282_s20] sm:$0xff] %v715_v39  ;;  %792 = vst [vmem:[%s282_s20 + $0x10] sm:$0xff] %v786_v40  ;;  %v717_v43 = vadd.f32 %v716_v41, %v559_v37  ;;  %v788_v44 = vadd.f32 %v787_v42, %v630_v38 }
 0x1c3   : > { %791 = vst [vmem:[%s282_s20 + $0x8] sm:$0xff] %v717_v43  ;;  %793 = vst [vmem:[%s282_s20 + $0x18] sm:$0xff] %v788_v44 }
 0x1c4   : > { %1044 = shalt.err (!%p1041_p3)
}
 0x1c5   : > { %s1045_s15 = scalar_lea.hbm %s1268_s8, 512  ;;  %s1049_s18 = scalar_lea.hbm %s1314_s6, 1024 }
 0x1c6   : > { %p1046_p5 = scmp.ne.s32.totalorder %s1268_s8, %s1045_s15  ;;  %p1050_p9 = scmp.lt.s32.totalorder %s1268_s8, %s1314_s6 }
 0x1c7   : > { %p1051_p12 = scmp.lt.s32.totalorder %s1049_s18, %s1045_s15 }
 0x1c8   : > { %p1047_p6 = pnand %p1046_p5, %p1192_p4 }
 0x1c9   : > { %p1052_p10 = por %p1051_p12, %p1050_p9 }
 0x1ca   : > { %p1048_p7 = pneg %p1047_p6 }
 0x1cc   : > { %p1053_p11 = pnand %p1052_p10, %p1048_p7 }
 0x1ce   : > { %1056 = shalt.err (!%p1053_p11)
}
 0x1cf   : > { %938 = dma.vmem_to_hbm [thread:$0]  (%p1192_p4), %s812_s27, 512, %s1268_s8, %s795_s24  }
 0x1d0 PF: > { %p950_p13 = scmp.ge.s32.totalorder %s1111_s26, 2  ;;  %s823_s28 = sand.u32 1, %s1091_s21  }
 0x1d1   : > { %s824_s30 = scalar_lea.sflag [#allocation4], %s823_s28 }
 0x1d2   : > { %p945_p0 = pnand %p950_p13, %p1199_p8 }
 0x1d4   : > { %p946_p1 = pneg %p945_p0 }
 0x1d6   : > { %1086 = dma.done.wait (%p946_p1), %s824_s30, 512  }
 0x1d7   : > { %1088 = vsyncadd (%p946_p1), %s824_s30, 4294966784  ;;  %s20_s26 = sadd.s32 1, %s1111_s26   ;;  %s1319_s21 = smov %s1095_s22 }
 0x1d8   : > { %p17_p2 = scmp.ge.s32.totalorder %s20_s26, 4   ;;  %s1320_s22 = smov %s1099_s23 }
 0x1d9   : > { %s1321_s23 = smov %s1205_s10  ;;  %s1322_s24 = smov %s1107_s25 }
 0x1da   : > { %s1323_s25 = smov %s1325_s29  ;;  %19 = sbr.rel (!%p17_p2) target bundleno = 5 (0x5), region = 84 }
 0x1df   :  { %829 = vsyncpa [#allocation3], 1 }
 0x1e0   :  { %831 = vsyncpa [#allocation3 + $0x1], 1 }
 0x1e1   :  { %832 = vsyncpa [#allocation4], 1 }
 0x1e2   :  { %834 = vsyncpa [#allocation4 + $0x1], 1 }

</bundles_post_ra>
